<compile_context>
chip_gen: v6e
topology: v6e:2x2x1
jax: 0.10.0
libtpu: 0.0.40
codegen_flags: <defaults>
</compile_context>

<pallas_src>
import functools

import jax
import jax.numpy as jnp
from jax.experimental import pallas as pl
from jax.experimental.pallas import tpu as pltpu

LANE = 128
SUBLANE = 8  # f32 sublanes per vreg; narrower dtypes pack 16/32 rows.


def _sublane_packing(dtype):
    itemsize = jnp.dtype(dtype).itemsize
    return {4: 8, 2: 16, 1: 32}.get(itemsize, 8)


def _device_kind():
    try:
        return jax.devices()[0].device_kind.lower()
    except Exception:  # pragma: no cover - defensive
        return ""


def _mse_partial_kernel(x_ref, y_ref, o_ref, acc_ref, *,
                        steps, row_tile, n_rows, n_acc, need_mask):
    s = pl.program_id(1)

    @pl.when(s == 0)
    def _():
        acc_ref[...] = jnp.zeros_like(acc_ref)

    d = x_ref[...].astype(jnp.float32) - y_ref[...].astype(jnp.float32)

    def accumulate(dd):
        d2 = dd * dd
        # (row_tile, 128) -> (row_tile/(n_acc*8), n_acc, 8, 128): the axis-0
        # reduce feeds n_acc independent (8,128) accumulation chains (pure VPU
        # adds, no cross-lane work), breaking the single long vadd dependency
        # chain so compute stays hidden under the DMA even on v7x.
        acc_ref[...] += d2.reshape(-1, n_acc, SUBLANE, LANE).sum(axis=0)

    if need_mask:
        c = pl.program_id(0)
        # int32 index math: only overflows past 2^31 slab rows (~2.7e11 elems).
        row_start = (c * steps + s) * row_tile
        is_interior = row_start + row_tile <= n_rows

        @pl.when(is_interior)
        def _():
            # Fast path: fully in-range tile, no iota/compare/select.
            accumulate(d)

        @pl.when(jnp.logical_not(is_interior))
        def _():
            # Edge tile (or fully out-of-range clamped duplicate tile): zero
            # out rows past the real slab before accumulating.
            local_row = jax.lax.broadcasted_iota(jnp.int32, d.shape, 0)
            accumulate(jnp.where(row_start + local_row < n_rows, d, 0.0))
    else:
        accumulate(d)

    @pl.when(s == steps - 1)
    def _():
        o_ref[...] = acc_ref[...].sum(axis=0).reshape(o_ref.shape)


def mse_loss(x, y, *, row_tile=None, n_cores=None):
    assert x.shape == y.shape, (x.shape, y.shape)
    n_elem = int(x.size)
    if n_elem == 0:
        return jnp.float32(0.0)

    if x.dtype != y.dtype:
        ct = jnp.promote_types(x.dtype, y.dtype)
        x = x.astype(ct)
        y = y.astype(ct)

    kind = _device_kind()
    if n_cores is None:
        # Dual-core / megacore chips (v4, v5p, v7x): real 2-way split of the
        # leading "parallel" axis. Single-TC v5e/v6e: n_cores=1 avoids clamped
        # duplicate-tile DMA traffic and usually removes the mask path.
        # TODO(synk): on v7x confirm "parallel" shards across both TensorCores;
        # if it silently runs on one TC, switch axis 0 to pltpu.CORE_PARALLEL.
        n_cores = 2 if any(t in kind for t in ("v4", "v5p", "v7")) else 1

    itemsize = jnp.dtype(x.dtype).itemsize
    packing = _sublane_packing(x.dtype)

    # Stream native dtype; the f32 cast happens in-kernel on the VPU.
    xf = jnp.ravel(x)
    yf = jnp.ravel(y)

    # Aligned prefix processed by the kernel (zero-copy reshape); the short
    # tail is reduced with plain jnp instead of jnp.pad-ing both full tensors.
    rows = (n_elem // (packing * LANE)) * packing
    n_aligned = rows * LANE

    tail_sum = jnp.float32(0.0)
    if n_aligned < n_elem:
        xt = xf[n_aligned:].astype(jnp.float32)
        yt = yf[n_aligned:].astype(jnp.float32)
        tail_sum = jnp.sum((xt - yt) ** 2)

    if rows == 0:
        # Input smaller than one packed vreg row-group: pure jnp fallback.
        return tail_sum / n_elem

    x2 = xf[:n_aligned].reshape(rows, LANE)
    y2 = yf[:n_aligned].reshape(rows, LANE)

    if row_tile is None:
        # ~4 MiB per input block per step => ~8 MiB of HBM traffic per grid
        # step, keeping the ~0.35us per-step overhead <10% on all chips.
        row_tile = (4 * 1024 * 1024) // (LANE * itemsize)
    row_tile = max(packing, min(row_tile, rows))
    row_tile = (row_tile // packing) * packing

    total_blocks = pl.cdiv(rows, row_tile)
    n_cores = max(1, min(n_cores, total_blocks))
    steps = pl.cdiv(total_blocks, n_cores)
    need_mask = (total_blocks * row_tile != rows) or (steps * n_cores != total_blocks)

    # Number of independent accumulator chains (n_acc * 8 must divide row_tile).
    n_acc = 1
    for cand in (8, 4, 2):
        if row_tile % (cand * SUBLANE) == 0:
            n_acc = cand
            break

    def in_idx(c, s):
        # Clamp so the edge core's DMA never targets a block past the array;
        # clamped (duplicate) tiles are fully masked out in the kernel.
        t = jnp.minimum(c * steps + s, total_blocks - 1)
        return (t, 0)

    kernel = functools.partial(
        _mse_partial_kernel,
        steps=steps, row_tile=row_tile, n_rows=rows, n_acc=n_acc,
        need_mask=need_mask)

    vmem_limit = (40 if "v7" in kind else 48) * 1024 * 1024

    partials = pl.pallas_call(
        kernel,
        out_shape=jax.ShapeDtypeStruct((n_cores, SUBLANE, LANE), jnp.float32),
        grid_spec=pltpu.PrefetchScalarGridSpec(
            num_scalar_prefetch=0,
            grid=(n_cores, steps),
            in_specs=[
                pl.BlockSpec((row_tile, LANE), in_idx),
                pl.BlockSpec((row_tile, LANE), in_idx),
            ],
            out_specs=pl.BlockSpec((1, SUBLANE, LANE), lambda c, s: (c, 0, 0)),
            scratch_shapes=[pltpu.VMEM((n_acc, SUBLANE, LANE), jnp.float32)],
        ),
        compiler_params=pltpu.CompilerParams(
            dimension_semantics=("parallel", "arbitrary"),
            vmem_limit_bytes=vmem_limit,
        ),
    )(x2, y2)

    # Single tiny cross-lane reduce + divide by the true element count.
    return (jnp.sum(partials) + tail_sum) / n_elem


if __name__ == "__main__":
    key = jax.random.PRNGKey(0)
    kx, ky = jax.random.split(key)
    x = jax.random.normal(kx, (2, 4, 16, 16), dtype=jnp.float32)
    y = jax.random.normal(ky, (2, 4, 16, 16), dtype=jnp.float32)

    loss = mse_loss(x, y)
    jax.block_until_ready(loss)

    ref = jnp.mean((x - y) ** 2)
    assert jnp.allclose(loss, ref, rtol=1e-5, atol=1e-6), (loss, ref)
    print("KERNEL_OK")
</pallas_src>

<mosaic_0001>
module attributes {stable_mosaic.version = 11 : i64} {
  func.func @_mse_partial_kernel(%arg0: i32, %arg1: i32, %arg2: memref<16x128xf32, #tpu.memory_space<vmem>>, %arg3: memref<16x128xf32, #tpu.memory_space<vmem>>, %arg4: memref<1x8x128xf32, #tpu.memory_space<vmem>>, %arg5: memref<2x8x128xf32, #tpu.memory_space<vmem>>) attributes {dimension_semantics = [#tpu.dimension_semantics<parallel>, #tpu.dimension_semantics<arbitrary>], iteration_bounds = array<i64: 1, 1>, scalar_prefetch = 0 : i64, scratch_operands = 1 : i64, tpu.core_type = #tpu.core_type<tc>, window_params = [{transform_indices = @transform_0, window_bounds = array<i64: 16, 128>}, {transform_indices = @transform_1, window_bounds = array<i64: 16, 128>}, {transform_indices = @transform_2, window_bounds = array<i64: 1, 8, 128>}]} {
    %c0_i32 = arith.constant 0 : i32
    %0 = arith.cmpi eq, %arg1, %c0_i32 : i32
    %1 = arith.extui %0 : i1 to i32
    %c0_i32_0 = arith.constant 0 : i32
    %2 = arith.cmpi ne, %1, %c0_i32_0 : i32
    scf.if %2 {
      %cst_12 = arith.constant 0.000000e+00 : f32
      %15 = vector.broadcast %cst_12 : f32 to vector<2x8x128xf32>
      %c0_13 = arith.constant 0 : index
      %c0_14 = arith.constant 0 : index
      %c0_15 = arith.constant 0 : index
      %16 = vector.load %arg5[%c0_13, %c0_14, %c0_15] : memref<2x8x128xf32, #tpu.memory_space<vmem>>, vector<2x8x128xf32>
      tpu.vector_store %arg5[%c0_13, %c0_14, %c0_15], %15 {strides = array<i32>} : memref<2x8x128xf32, #tpu.memory_space<vmem>>, vector<2x8x128xf32>,
    } else {
    }
    %c0 = arith.constant 0 : index
    %c0_1 = arith.constant 0 : index
    %3 = vector.load %arg2[%c0, %c0_1] : memref<16x128xf32, #tpu.memory_space<vmem>>, vector<16x128xf32>
    %c0_2 = arith.constant 0 : index
    %c0_3 = arith.constant 0 : index
    %4 = vector.load %arg3[%c0_2, %c0_3] : memref<16x128xf32, #tpu.memory_space<vmem>>, vector<16x128xf32>
    %5 = arith.subf %3, %4 : vector<16x128xf32>
    %6 = arith.mulf %5, %5 : vector<16x128xf32>
    %c0_4 = arith.constant 0 : index
    %c0_5 = arith.constant 0 : index
    %c0_6 = arith.constant 0 : index
    %7 = vector.load %arg5[%c0_4, %c0_5, %c0_6] : memref<2x8x128xf32, #tpu.memory_space<vmem>>, vector<2x8x128xf32>
    %8 = vector.shape_cast %6 : vector<16x128xf32> to vector<1x2x8x128xf32>
    %cst = arith.constant dense<0.000000e+00> : vector<2x8x128xf32>
    %9 = vector.multi_reduction <add>, %8, %cst [0] : vector<1x2x8x128xf32> to vector<2x8x128xf32>
    %10 = arith.addf %7, %9 : vector<2x8x128xf32>
    %c0_7 = arith.constant 0 : index
    %c0_8 = arith.constant 0 : index
    %c0_9 = arith.constant 0 : index
    %11 = vector.load %arg5[%c0_7, %c0_8, %c0_9] : memref<2x8x128xf32, #tpu.memory_space<vmem>>, vector<2x8x128xf32>
    tpu.vector_store %arg5[%c0_7, %c0_8, %c0_9], %10 {strides = array<i32>} : memref<2x8x128xf32, #tpu.memory_space<vmem>>, vector<2x8x128xf32>,
    %c0_i32_10 = arith.constant 0 : i32
    %12 = arith.cmpi eq, %arg1, %c0_i32_10 : i32
    %13 = arith.extui %12 : i1 to i32
    %c0_i32_11 = arith.constant 0 : i32
    %14 = arith.cmpi ne, %13, %c0_i32_11 : i32
    scf.if %14 {
      %c0_12 = arith.constant 0 : index
      %c0_13 = arith.constant 0 : index
      %c0_14 = arith.constant 0 : index
      %15 = vector.load %arg5[%c0_12, %c0_13, %c0_14] : memref<2x8x128xf32, #tpu.memory_space<vmem>>, vector<2x8x128xf32>
      %cst_15 = arith.constant dense<0.000000e+00> : vector<8x128xf32>
      %16 = vector.multi_reduction <add>, %15, %cst_15 [0] : vector<2x8x128xf32> to vector<8x128xf32>
      %17 = vector.shape_cast %16 : vector<8x128xf32> to vector<1x8x128xf32>
      %c0_16 = arith.constant 0 : index
      %c0_17 = arith.constant 0 : index
      %c0_18 = arith.constant 0 : index
      %18 = vector.load %arg4[%c0_16, %c0_17, %c0_18] : memref<1x8x128xf32, #tpu.memory_space<vmem>>, vector<1x8x128xf32>
      tpu.vector_store %arg4[%c0_16, %c0_17, %c0_18], %17 {strides = array<i32>} : memref<1x8x128xf32, #tpu.memory_space<vmem>>, vector<1x8x128xf32>,
    } else {
    }
    return
  }
  func.func @transform_0(%arg0: i32, %arg1: i32) -> (i32, i32) {
    %c1_i32 = arith.constant 1 : i32
    %0 = arith.muli %arg0, %c1_i32 : i32
    %1 = arith.addi %0, %arg1 : i32
    %c0_i32 = arith.constant 0 : i32
    %2 = arith.minsi %1, %c0_i32 : i32
    %c0_i32_0 = arith.constant 0 : i32
    %c0_i32_1 = arith.constant 0 : i32
    return %2, %c0_i32_0 : i32, i32
  }
  func.func @transform_1(%arg0: i32, %arg1: i32) -> (i32, i32) {
    %c1_i32 = arith.constant 1 : i32
    %0 = arith.muli %arg0, %c1_i32 : i32
    %1 = arith.addi %0, %arg1 : i32
    %c0_i32 = arith.constant 0 : i32
    %2 = arith.minsi %1, %c0_i32 : i32
    %c0_i32_0 = arith.constant 0 : i32
    %c0_i32_1 = arith.constant 0 : i32
    return %2, %c0_i32_0 : i32, i32
  }
  func.func @transform_2(%arg0: i32, %arg1: i32) -> (i32, i32, i32) {
    %c0_i32 = arith.constant 0 : i32
    %c0_i32_0 = arith.constant 0 : i32
    %c0_i32_1 = arith.constant 0 : i32
    return %arg0, %c0_i32, %c0_i32_0 : i32, i32, i32
  }
}

</mosaic_0001>

<bundles_post_ra>
// kernel: tpu_custom_call.1
= control target key start
LH: loop header
LB: loop body
LE: loop exit
PB: predicated region body
PF: predicated region fallthrough
CT: control target
= control target key end

     0   :  { %7 = vsyncpa [#allocation4], 0  ;;  %s209_s0 = inlined_call_operand.hbm [shape: f32[16,128], index: 0, kind: input, shape index: {}]   ;;  %s210_s1 = inlined_call_operand.hbm [shape: f32[16,128], index: 1, kind: input, shape index: {}]   ;;  %s211_s2 = inlined_call_operand.hbm [shape: f32[1,8,128], index: 2, kind: output, shape index: {}]  }
   0x1   :  { %8 = vsyncpa [#allocation7], 0 }
   0x2   :  { %9 = vsyncpa [#allocation5], 0  ;;  %s180_s9 = smov [#allocation3]  }
   0x3   :  { %s21_s10 = sshll.u32 %s180_s9, 4  ;;  %s22_s10 = int_to_ptr.vmem [resolvable:$true] %s21_s10 }
   0x4   :  { %s122_s11 = scalar_lea.vmem %s22_s10, 256  ;;  %p127_p1 = scmp.lt.s32.totalorder %s22_s10, %s22_s10 }
   0x5   :  { %p123_p0 = scmp.ne.s32.totalorder %s22_s10, %s122_s11  ;;  %p128_p2 = scmp.lt.s32.totalorder %s122_s11, %s122_s11 }
   0x7   :  { %p129_p3 = por %p128_p2, %p127_p1 }
   0x9   :  { %p130_p4 = pnand %p129_p3, %p123_p0 }
   0xb   :  { %133 = shalt.err (!%p130_p4)
}
   0xc   :  { %s181_s12 = smov 128   ;;  %s182_s13 = smov 8  }
   0xd   :  { %27 = dma.hbm_to_vmem [thread:$0]  %s209_s0, 256, %s22_s10, [#allocation4], %s181_s12, %s181_s12, %s182_s13  }
   0xe   :  { %s183_s16 = smov [#allocation6]  }
   0xf   :  { %s39_s17 = sshll.u32 %s183_s16, 4  ;;  %s40_s17 = int_to_ptr.vmem [resolvable:$true] %s39_s17 }
  0x10   :  { %s142_s18 = scalar_lea.vmem %s40_s17, 256  ;;  %p147_p6 = scmp.lt.s32.totalorder %s40_s17, %s40_s17 }
  0x11   :  { %p143_p5 = scmp.ne.s32.totalorder %s40_s17, %s142_s18  ;;  %p148_p7 = scmp.lt.s32.totalorder %s142_s18, %s142_s18 }
  0x13   :  { %p149_p8 = por %p148_p7, %p147_p6 }
  0x15   :  { %p150_p9 = pnand %p149_p8, %p143_p5 }
  0x17   :  { %153 = shalt.err (!%p150_p9)
}
  0x18   :  { %45 = dma.hbm_to_vmem [thread:$0]  %s210_s1, 256, %s40_s17, [#allocation7], %s181_s12, %s181_s12, %s182_s13  }
  0x19   :  { %174 = dma.done.wait [#allocation4], 256  }
  0x1a   :  { %175 = vsyncadd [#allocation4], 4294967040 }
  0x1b   :  { %176 = dma.done.wait [#allocation7], 256  }
  0x1c   :  { %177 = vsyncadd [#allocation7], 4294967040  ;;  %v66_v0 = vld [vmem:[#allocation3] sm:$0xff]  ;;  %v67_v1 = vld [vmem:[#allocation3 + $0x8] sm:$0xff]  ;;  %s184_s0 = smov [#allocation8]  }
  0x1d   :  { %v68_v2 = vld [vmem:[#allocation6] sm:$0xff]  ;;  %v69_v3 = vld [vmem:[#allocation6 + $0x8] sm:$0xff]  ;;  %s95_s21 = sshll.u32 %s184_s0, 4  ;;  %s96_s21 = int_to_ptr.vmem [resolvable:$true] %s95_s21 }
  0x1e   :  { %v70_v4 = vsub.f32 %v66_v0, %v68_v2  ;;  %v71_v5 = vsub.f32 %v67_v1, %v69_v3  ;;  %s154_s22 = scalar_lea.vmem %s96_s21, 128  ;;  %p159_p11 = scmp.lt.s32.totalorder %s96_s21, %s96_s21 }
  0x1f   :  { %p155_p10 = scmp.ne.s32.totalorder %s96_s21, %s154_s22  ;;  %p160_p12 = scmp.lt.s32.totalorder %s154_s22, %s154_s22 }
  0x20   :  { %v72_v6 = vmul.f32 %v70_v4, %v70_v4  ;;  %v73_v7 = vmul.f32 %v71_v5, %v71_v5 }
  0x21   :  { %p161_p13 = por %p160_p12, %p159_p11 }
  0x22   :  { %v87_v8 = vadd.f32 %v73_v7, %v72_v6 }
  0x23   :  { %p162_p0 = pnand %p161_p13, %p155_p10 }
  0x24   :  { %88 = vst [vmem:[#allocation8] sm:$0xff] %v87_v8 }
  0x25   :  { %165 = shalt.err (!%p162_p0)
}
  0x26   :  { %98 = dma.vmem_to_hbm [thread:$0]  %s96_s21, 128, %s211_s2, [#allocation5]  }
  0x27   :  { %178 = dma.done.wait [#allocation5], 128  }
  0x28   :  { %179 = vsyncadd [#allocation5], 4294967168 }
  0x29   :  { %102 = vsyncpa [#allocation4], 1 }
  0x2a   :  { %103 = vsyncpa [#allocation7], 1 }
  0x2b   :  { %104 = vsyncpa [#allocation5], 1 }

</bundles_post_ra>
